<compile_context>
chip_gen: v6e
topology: v6e:2x2x1
jax: 0.10.0
libtpu: 0.0.40
codegen_flags: <defaults>
</compile_context>

<pallas_src>
import functools

import jax
import jax.numpy as jnp
from jax.experimental import pallas as pl
from jax.experimental.pallas import tpu as pltpu


def _round_up(x, m):
    return ((x + m - 1) // m) * m


def generator_kernel(z_ref, c_ref, w1z_ref, w1c_ref, b1_ref, w2_ref, b2_ref, o_ref,
                     *, matmul_dtype):
    # Cast activations to the matmul dtype in-kernel (cheap VPU op, hidden under DMA).
    zd = z_ref[...].astype(matmul_dtype)
    cd = c_ref[...].astype(matmul_dtype)

    # First layer as a split matmul (replaces torch.cat([z, cond], dim=1) @ W1).
    h = jnp.dot(zd, w1z_ref[...], preferred_element_type=jnp.float32)
    h = h + jnp.dot(cd, w1c_ref[...], preferred_element_type=jnp.float32)
    h = jnp.maximum(h + b1_ref[...], 0.0)            # bias + ReLU in f32

    # Second layer (hidden padded to 128 on the sublane dim; output stays d_out wide).
    y = jnp.dot(h.astype(w2_ref.dtype), w2_ref[...], preferred_element_type=jnp.float32)
    o_ref[...] = (y + b2_ref[...]).astype(o_ref.dtype)


def prepare_generator_params(w1, b1, w2, b2, noise_dim, *, matmul_dtype=jnp.bfloat16):
    """One-time parameter prep (split W1, pad hidden dim to 128, cast to matmul dtype).

    w1: (noise_dim + cond_dim, hidden), w2: (hidden, d_out)  -- transposed vs nn.Linear.
    Padding is exact: padded hidden units see zero weights + zero bias, ReLU(0)=0, and the
    corresponding (zero-padded) rows of w2 contribute nothing.
    """
    d_in, hidden = w1.shape
    hidden2, d_out = w2.shape
    assert hidden2 == hidden
    H = _round_up(hidden, 128)

    w1 = jnp.asarray(w1, jnp.float32)
    w2 = jnp.asarray(w2, jnp.float32)
    w1z = jnp.pad(w1[:noise_dim], ((0, 0), (0, H - hidden))).astype(matmul_dtype)
    w1c = jnp.pad(w1[noise_dim:], ((0, 0), (0, H - hidden))).astype(matmul_dtype)
    b1p = jnp.pad(jnp.reshape(b1, (1, hidden)).astype(jnp.float32), ((0, 0), (0, H - hidden)))
    w2p = jnp.pad(w2, ((0, H - hidden), (0, 0))).astype(matmul_dtype)
    b2p = jnp.reshape(b2, (1, d_out)).astype(jnp.float32)
    return (w1z, w1c, b1p, w2p, b2p)


def generator_forward(z, cond_info, params, *, block_b=4096,
                      matmul_dtype=jnp.bfloat16, out_dtype=jnp.float32):
    """z: (B, noise_dim), cond_info: (B, cond_dim); params from prepare_generator_params."""
    w1z, w1c, b1p, w2p, b2p = params
    z = jnp.asarray(z, jnp.float32)
    cond_info = jnp.asarray(cond_info, jnp.float32)

    B, noise_dim = z.shape
    Bc, cond_dim = cond_info.shape
    assert B == Bc
    assert w1z.shape[0] == noise_dim and w1c.shape[0] == cond_dim
    H = w1z.shape[1]
    d_out = w2p.shape[1]

    # Batch tile: multiple of 8.  For large batches cap it so the grid keeps >= ~8 steps
    # (dimension_semantics=("parallel",) then shards the axis across both v7x TensorCores);
    # for small batches a single (possibly ragged) tile is fine.
    tb = min(block_b, _round_up(B, 8))
    if B >= 8 * 1024:
        tb = min(tb, max(1024, _round_up(pl.cdiv(B, 8), 8)))
    grid = (pl.cdiv(B, tb),)

    tiled = lambda shape: pl.BlockSpec(shape, lambda i: (i, 0))       # batch-tiled
    resident = lambda shape: pl.BlockSpec(shape, lambda i: (0, 0))    # VMEM-resident params

    itemsize = jnp.dtype(matmul_dtype).itemsize
    bytes_accessed = (
        (z.size + cond_info.size) * 4                                  # activation reads (f32)
        + B * d_out * jnp.dtype(out_dtype).itemsize                    # output writes
        + (w1z.size + w1c.size + w2p.size) * itemsize                  # params (fetched once)
        + (b1p.size + b2p.size) * 4
    )
    cost = pl.CostEstimate(
        flops=2 * B * ((noise_dim + cond_dim) * H + H * d_out),
        transcendentals=0,
        bytes_accessed=int(bytes_accessed),
    )

    kernel = functools.partial(generator_kernel, matmul_dtype=matmul_dtype)
    out = pl.pallas_call(
        kernel,
        out_shape=jax.ShapeDtypeStruct((B, d_out), out_dtype),
        grid=grid,
        in_specs=[
            tiled((tb, noise_dim)),
            tiled((tb, cond_dim)),
            resident(w1z.shape),
            resident(w1c.shape),
            resident(b1p.shape),
            resident(w2p.shape),
            resident(b2p.shape),
        ],
        out_specs=tiled((tb, d_out)),
        compiler_params=pltpu.CompilerParams(dimension_semantics=("parallel",)),
        cost_estimate=cost,
    )(z, cond_info, w1z, w1c, b1p, w2p, b2p)
    return out


def init_linear_params(key, fan_in, fan_out):
    """PyTorch-style default Linear init: U(-1/sqrt(fan_in), 1/sqrt(fan_in)).
    Weight returned as (fan_in, fan_out), i.e. transposed relative to nn.Linear."""
    kw, kb = jax.random.split(key)
    bound = 1.0 / jnp.sqrt(jnp.float32(fan_in))
    w = jax.random.uniform(kw, (fan_in, fan_out), jnp.float32, -bound, bound)
    b = jax.random.uniform(kb, (1, fan_out), jnp.float32, -bound, bound)
    return w, b


if __name__ == "__main__":
    # Small shapes consistent with the module's forward.
    batch = 8
    cond_dim = 12
    noise_dim = 20
    hidden = 50
    output_dim = 32

    key = jax.random.PRNGKey(0)
    k_z, k_c, k_l1, k_l2 = jax.random.split(key, 4)

    z = jax.random.normal(k_z, (batch, noise_dim), jnp.float32)
    cond_info = jax.random.normal(k_c, (batch, cond_dim), jnp.float32)

    w1, b1 = init_linear_params(k_l1, cond_dim + noise_dim, hidden)
    w2, b2 = init_linear_params(k_l2, hidden, output_dim)

    # Parameter prep happens once, outside the per-call path.
    params = prepare_generator_params(w1, b1, w2, b2, noise_dim)

    fwd = jax.jit(generator_forward)
    out = fwd(z, cond_info, params)
    out = jax.block_until_ready(out)

    # Reference mirroring the kernel's mixed precision (bf16 operands, f32 accumulation,
    # f32 bias/ReLU, hidden re-rounded to bf16 before the second matmul).
    # TODO(synk): bf16 matmul operands deviate ~1e-2 from a pure-f32 PyTorch Generator; set
    # matmul_dtype=jnp.float32 if exact f32 semantics are required.
    f32 = lambda a: a.astype(jnp.bfloat16).astype(jnp.float32)
    x_ref = jnp.concatenate([f32(z), f32(cond_info)], axis=1)
    h_ref = jnp.maximum(x_ref @ f32(w1) + b1, 0.0)
    ref = f32(h_ref) @ f32(w2) + b2

    assert out.shape == (batch, output_dim)
    assert jnp.allclose(out, ref, atol=1e-2, rtol=1e-2), float(jnp.max(jnp.abs(out - ref)))

    print("KERNEL_OK")
</pallas_src>

<mosaic_0001>
module attributes {stable_mosaic.version = 11 : i64} {
  func.func @generator_kernel(%arg0: i32, %arg1: memref<8x20xf32, #tpu.memory_space<vmem>>, %arg2: memref<8x12xf32, #tpu.memory_space<vmem>>, %arg3: memref<20x128xbf16, #tpu.memory_space<vmem>>, %arg4: memref<12x128xbf16, #tpu.memory_space<vmem>>, %arg5: memref<1x128xf32, #tpu.memory_space<vmem>>, %arg6: memref<128x32xbf16, #tpu.memory_space<vmem>>, %arg7: memref<1x32xf32, #tpu.memory_space<vmem>>, %arg8: memref<8x32xf32, #tpu.memory_space<vmem>>) attributes {dimension_semantics = [#tpu.dimension_semantics<parallel>], iteration_bounds = array<i64: 1>, scalar_prefetch = 0 : i64, scratch_operands = 0 : i64, tpu.core_type = #tpu.core_type<tc>, window_params = [{transform_indices = @transform_0, window_bounds = array<i64: 8, 20>}, {transform_indices = @transform_1, window_bounds = array<i64: 8, 12>}, {pipeline_mode = #tpu.pipeline_mode<synchronous>, transform_indices = @transform_2, window_bounds = array<i64: 20, 128>}, {pipeline_mode = #tpu.pipeline_mode<synchronous>, transform_indices = @transform_3, window_bounds = array<i64: 12, 128>}, {pipeline_mode = #tpu.pipeline_mode<synchronous>, transform_indices = @transform_4, window_bounds = array<i64: 1, 128>}, {pipeline_mode = #tpu.pipeline_mode<synchronous>, transform_indices = @transform_5, window_bounds = array<i64: 128, 32>}, {pipeline_mode = #tpu.pipeline_mode<synchronous>, transform_indices = @transform_6, window_bounds = array<i64: 1, 32>}, {transform_indices = @transform_7, window_bounds = array<i64: 8, 32>}]} {
    %c0 = arith.constant 0 : index
    %c0_0 = arith.constant 0 : index
    %0 = vector.load %arg1[%c0, %c0_0] : memref<8x20xf32, #tpu.memory_space<vmem>>, vector<8x20xf32>
    %1 = arith.truncf %0 : vector<8x20xf32> to vector<8x20xbf16>
    %c0_1 = arith.constant 0 : index
    %c0_2 = arith.constant 0 : index
    %2 = vector.load %arg2[%c0_1, %c0_2] : memref<8x12xf32, #tpu.memory_space<vmem>>, vector<8x12xf32>
    %3 = arith.truncf %2 : vector<8x12xf32> to vector<8x12xbf16>
    %c0_3 = arith.constant 0 : index
    %c0_4 = arith.constant 0 : index
    %4 = vector.load %arg3[%c0_3, %c0_4] : memref<20x128xbf16, #tpu.memory_space<vmem>>, vector<20x128xbf16>
    %cst = arith.constant dense<0.000000e+00> : vector<8x128xf32>
    %5 = tpu.matmul %1, %4, %cst {dimension_numbers = #tpu.dot_dimension_numbers<[1], [0], [0], [1], [0, 0, 1, 1], [], []>} : vector<8x20xbf16>, vector<20x128xbf16>, vector<8x128xf32> -> vector<8x128xf32>
    %c0_5 = arith.constant 0 : index
    %c0_6 = arith.constant 0 : index
    %6 = vector.load %arg4[%c0_5, %c0_6] : memref<12x128xbf16, #tpu.memory_space<vmem>>, vector<12x128xbf16>
    %cst_7 = arith.constant dense<0.000000e+00> : vector<8x128xf32>
    %7 = tpu.matmul %3, %6, %cst_7 {dimension_numbers = #tpu.dot_dimension_numbers<[1], [0], [0], [1], [0, 0, 1, 1], [], []>} : vector<8x12xbf16>, vector<12x128xbf16>, vector<8x128xf32> -> vector<8x128xf32>
    %8 = arith.addf %5, %7 : vector<8x128xf32>
    %c0_8 = arith.constant 0 : index
    %c0_9 = arith.constant 0 : index
    %9 = vector.load %arg5[%c0_8, %c0_9] : memref<1x128xf32, #tpu.memory_space<vmem>>, vector<1x128xf32>
    %10 = vector.broadcast %9 : vector<1x128xf32> to vector<8x128xf32>
    %11 = arith.addf %8, %10 : vector<8x128xf32>
    %cst_10 = arith.constant 0.000000e+00 : f32
    %12 = vector.broadcast %cst_10 : f32 to vector<8x128xf32>
    %13 = arith.maximumf %11, %12 : vector<8x128xf32>
    %14 = arith.truncf %13 : vector<8x128xf32> to vector<8x128xbf16>
    %c0_11 = arith.constant 0 : index
    %c0_12 = arith.constant 0 : index
    %15 = vector.load %arg6[%c0_11, %c0_12] : memref<128x32xbf16, #tpu.memory_space<vmem>>, vector<128x32xbf16>
    %cst_13 = arith.constant dense<0.000000e+00> : vector<8x32xf32>
    %16 = tpu.matmul %14, %15, %cst_13 {dimension_numbers = #tpu.dot_dimension_numbers<[1], [0], [0], [1], [0, 0, 1, 1], [], []>} : vector<8x128xbf16>, vector<128x32xbf16>, vector<8x32xf32> -> vector<8x32xf32>
    %c0_14 = arith.constant 0 : index
    %c0_15 = arith.constant 0 : index
    %17 = vector.load %arg7[%c0_14, %c0_15] : memref<1x32xf32, #tpu.memory_space<vmem>>, vector<1x32xf32>
    %18 = vector.broadcast %17 : vector<1x32xf32> to vector<8x32xf32>
    %19 = arith.addf %16, %18 : vector<8x32xf32>
    %c0_16 = arith.constant 0 : index
    %c0_17 = arith.constant 0 : index
    %20 = vector.load %arg8[%c0_16, %c0_17] : memref<8x32xf32, #tpu.memory_space<vmem>>, vector<8x32xf32>
    tpu.vector_store %arg8[%c0_16, %c0_17], %19 {strides = array<i32>} : memref<8x32xf32, #tpu.memory_space<vmem>>, vector<8x32xf32>,
    return
  }
  func.func @transform_0(%arg0: i32) -> (i32, i32) {
    %c0_i32 = arith.constant 0 : i32
    %c0_i32_0 = arith.constant 0 : i32
    return %arg0, %c0_i32 : i32, i32
  }
  func.func @transform_1(%arg0: i32) -> (i32, i32) {
    %c0_i32 = arith.constant 0 : i32
    %c0_i32_0 = arith.constant 0 : i32
    return %arg0, %c0_i32 : i32, i32
  }
  func.func @transform_2(%arg0: i32) -> (i32, i32) {
    %c0_i32 = arith.constant 0 : i32
    %c0_i32_0 = arith.constant 0 : i32
    %c0_i32_1 = arith.constant 0 : i32
    return %c0_i32, %c0_i32_0 : i32, i32
  }
  func.func @transform_3(%arg0: i32) -> (i32, i32) {
    %c0_i32 = arith.constant 0 : i32
    %c0_i32_0 = arith.constant 0 : i32
    %c0_i32_1 = arith.constant 0 : i32
    return %c0_i32, %c0_i32_0 : i32, i32
  }
  func.func @transform_4(%arg0: i32) -> (i32, i32) {
    %c0_i32 = arith.constant 0 : i32
    %c0_i32_0 = arith.constant 0 : i32
    %c0_i32_1 = arith.constant 0 : i32
    return %c0_i32, %c0_i32_0 : i32, i32
  }
  func.func @transform_5(%arg0: i32) -> (i32, i32) {
    %c0_i32 = arith.constant 0 : i32
    %c0_i32_0 = arith.constant 0 : i32
    %c0_i32_1 = arith.constant 0 : i32
    return %c0_i32, %c0_i32_0 : i32, i32
  }
  func.func @transform_6(%arg0: i32) -> (i32, i32) {
    %c0_i32 = arith.constant 0 : i32
    %c0_i32_0 = arith.constant 0 : i32
    %c0_i32_1 = arith.constant 0 : i32
    return %c0_i32, %c0_i32_0 : i32, i32
  }
  func.func @transform_7(%arg0: i32) -> (i32, i32) {
    %c0_i32 = arith.constant 0 : i32
    %c0_i32_0 = arith.constant 0 : i32
    return %arg0, %c0_i32 : i32, i32
  }
}

</mosaic_0001>

<bundles_post_ra>
// kernel: generator_forward.1
= control target key start
LH: loop header
LB: loop body
LE: loop exit
PB: predicated region body
PF: predicated region fallthrough
CT: control target
= control target key end

     0   :  { %vm46_vm0 = vcmask 1045504   ;;  %v383_v0 = vmov 0.0   ;;  %vm384_vm1 = vmmov 0   ;;  %vm103_vm2 = vcmask 1041408   ;;  %s477_s0 = inlined_call_operand.vmem [shape: f32[8,20], index: 0, kind: input, shape index: {}]   ;;  %s478_s1 = inlined_call_operand.vmem [shape: f32[8,12], index: 1, kind: input, shape index: {}]   ;;  %s479_s2 = inlined_call_operand.vmem [shape: bf16[20,128], index: 2, kind: input, shape index: {}]   ;;  %s480_s3 = inlined_call_operand.vmem [shape: bf16[12,128], index: 3, kind: input, shape index: {}]   ;;  %s481_s4 = inlined_call_operand.vmem [shape: f32[1,128], index: 4, kind: input, shape index: {}]   ;;  %s482_s5 = inlined_call_operand.vmem [shape: bf16[128,32], index: 5, kind: input, shape index: {}]   ;;  %s483_s6 = inlined_call_operand.vmem [shape: f32[1,32], index: 6, kind: input, shape index: {}]   ;;  %s484_s7 = inlined_call_operand.hbm [shape: f32[8,32], index: 7, kind: output, shape index: {}]  }
   0x1   :  { %313 = vmatprep.subr.bf16.mxu1 %v383_v0  ;;  %v350_v1 = vld [vmem:[%s480_s3] sm:$0x3f]   ;;  %327 = vmatprep.subr.bf16.mxu0 %v383_v0  ;;  %v351_v3 = vld [vmem:[%s479_s2 + $0x8] ss:$0 sps:$4 sm:$0x33]   ;;  %vm42_vm3 = vcmask 97280  }
   0x2   :  { %v30_v2 = vld [vmem:[%s478_s1] sm:$0xff]  ;;  %315 = vmatprep.mubr.msk.bf16.mxu1 %vm384_vm1, %v383_v0  ;;  %343 = vmatprep.mubr.msk.bf16.mxu0 %vm384_vm1, %v383_v0  ;;  %v48_v4 = vsel %vm46_vm0, %v350_v1, 0  ;;  %v105_v6 = vsel %vm103_vm2, %v351_v3, 0  ;;  %v353_v7 = vld [vmem:[%s482_s5 + $0x38] sm:$0xff]   ;;  %v354_v9 = vld [vmem:[%s482_s5 + $0x30] sm:$0xff]  }
   0x3   :  { %v31_v5 = vpack.c.bf16 %v30_v2, %v30_v2  ;;  %314 = vmatpush3.bf16.msra.mxu1 %v48_v4  ;;  %v352_v8 = vld [vmem:[%s479_s2] sm:$0xff]   ;;  %328 = vmatpush3.bf16.msra.mxu0 %v353_v7  ;;  %v355_v12 = vld [vmem:[%s482_s5 + $0x28] sm:$0xff]  }
   0x4   :  { %319 = vmatprep.subr.bf16.mxu1 %v383_v0  ;;  %v28_v10 = vld [vmem:[%s477_s0] sm:$0xff]  ;;  %329 = vmatprep.subr.bf16.mxu0 %v383_v0 }
   0x5   :  { %v29_v11 = vpack.c.bf16 %v28_v10, %v28_v10 }
   0x6   :  { %316 = vmatmul.mubr.msk.bf16.vlgmr.msra.gmra.mxu1 %vm42_vm3, %v31_v5 }
   0x7   :  { %320 = vmatpush3.bf16.msra.mxu1 %v105_v6  ;;  %323 = vmatprep.mubr.msk.bf16.mxu1 %vm384_vm1, %v383_v0 }
   0x8   :  { %321 = vmatprep.subr.bf16.mxu1 %v383_v0  ;;  %330 = vmatpush3.bf16.msra.mxu0 %v354_v9 }
   0x9   :  { %12 = vsyncpa [#allocation3], 0  ;;  %vm99_vm4 = vcmask 162816   ;;  %331 = vmatprep.subr.bf16.mxu0 %v383_v0  ;;  %v356_v13 = vld [vmem:[%s482_s5 + $0x20] sm:$0xff]   ;;  %v357_v14 = vld [vmem:[%s482_s5 + $0x18] sm:$0xff]   ;;  %s385_s26 = smov [#allocation2]  }
   0xa   :  { %v358_v15 = vld [vmem:[%s482_s5 + $0x10] sm:$0xff]   ;;  %v359_v16 = vld [vmem:[%s482_s5 + $0x8] sm:$0xff]   ;;  %v360_v17 = vld [vmem:[%s482_s5] sm:$0xff]   ;;  %s276_s27 = sshll.u32 %s385_s26, 4  ;;  %vm268_vm5 = vcmask 261120   ;;  %s277_s27 = int_to_ptr.vmem [resolvable:$true] %s276_s27 }
   0xb   :  { %322 = vmatpush3.bf16.msra.mxu1 %v352_v8  ;;  %v289_v23 = vld [vmem:[%s481_s4] ss:$0 sm:$0xff]  ;;  %s361_s4 = scalar_lea.vmem %s277_s27, 128  ;;  %p366_p1 = scmp.lt.s32.totalorder %s277_s27, %s277_s27 }
   0xc   :  { %332 = vmatpush3.bf16.msra.mxu0 %v355_v12  ;;  %v290_v31 = vld [vmem:[%s483_s6] ss:$0 sm:$0xff]  ;;  %p362_p0 = scmp.ne.s32.totalorder %s277_s27, %s361_s4  ;;  %p367_p2 = scmp.lt.s32.totalorder %s361_s4, %s361_s4 }
   0xd   :  { %333 = vmatprep.subr.bf16.mxu0 %v383_v0 }
   0xe   :  { %324 = vmatmul.mubr.msk.bf16.vlgmr.msra.gmra.mxu1 %vm99_vm4, %v29_v11  ;;  %p368_p3 = por %p367_p2, %p366_p1 }
  0x10   :  { %334 = vmatpush3.bf16.msra.mxu0 %v356_v13  ;;  %p369_p4 = pnand %p368_p3, %p362_p0 }
  0x11   :  { %335 = vmatprep.subr.bf16.mxu0 %v383_v0 }
  0x14   :  { %336 = vmatpush3.bf16.msra.mxu0 %v357_v14 }
  0x15   :  { %337 = vmatprep.subr.bf16.mxu0 %v383_v0 }
  0x18   :  { %338 = vmatpush3.bf16.msra.mxu0 %v358_v15 }
  0x19   :  { %339 = vmatprep.subr.bf16.mxu0 %v383_v0 }
  0x1c   :  { %340 = vmatpush3.bf16.msra.mxu0 %v359_v16 }
  0x1d   :  { %341 = vmatprep.subr.bf16.mxu0 %v383_v0 }
  0x20   :  { %342 = vmatpush3.bf16.msra.mxu0 %v360_v17 }
  0xc6   :  { %v84_v18 = vpop.f32.mrf.mxu1 }
  0xc8   :  { %v317_v19 = vpop.f32.mrf.mxu1 }
  0xca   :  { %v87_v20 = vpop.f32.mrf.mxu1 }
  0xcc   :  { %v318_v21 = vpop.f32.mrf.mxu1 }
  0xce   :  { %v141_v22 = vpop.f32.mrf.mxu1 }
  0xcf   :  { %v142_v24 = vadd.f32 %v141_v22, %v84_v18 }
  0xd0   :  { %v325_v25 = vpop.f32.mrf.mxu1 }
  0xd1   :  { %v154_v26 = vadd.f32 %v289_v23, %v142_v24 }
  0xd2   :  { %v144_v27 = vpop.f32.mrf.mxu1 }
  0xd3   :  { %v155_v28 = vmax.f32 %v154_v26, 0.0 }
  0xd4   :  { %v326_v29 = vpop.f32.mrf.mxu1 }
  0xd5   :  { %v156_v30 = vpack.c.bf16 %v155_v28, %v155_v28 }
  0xd7   :  { %344 = vmatmul.mubr.bf16.vlgmr.msra.gmra.mxu0 %v156_v30 }
 0x197   :  { %v262_v32 = vpop.f32.mrf.mxu0 }
 0x198   :  { %v263_v33 = vadd.f32 %v290_v31, %v262_v32 }
 0x199   :  { %v345_v34 = vpop.f32.mrf.mxu0 }
 0x19a   :  { %269 = vst.msk [vmem:[#allocation2] sm:$0xff] %vm268_vm5, %v263_v33 }
 0x19b   :  { %v265_v35 = vpop.f32.mrf.mxu0 }
 0x19c   :  { %372 = shalt.err (!%p369_p4)
}
 0x19d   :  { %279 = dma.vmem_to_hbm [thread:$0]  %s277_s27, 128, %s484_s7, [#allocation3]   ;;  %v346_v36 = vpop.f32.mrf.mxu0 }
 0x19e   :  { %381 = dma.done.wait [#allocation3], 128  }
 0x19f   :  { %382 = vsyncadd [#allocation3], 4294967168 }
 0x1a0   :  { %283 = vsyncpa [#allocation3], 1 }

</bundles_post_ra>
